<compile_context>
chip_gen: v7x
topology: tpu7x:2x2x1
jax: 0.10.0
libtpu: 0.0.40
codegen_flags: <defaults>
</compile_context>

<pallas_src>
import jax
import jax.numpy as jnp
from jax import lax
from jax.experimental import pallas as pl
from jax.experimental.pallas import tpu as pltpu

EPS = 1e-5  # PyTorch nn.LayerNorm default eps


def _round_up(v, m):
    return ((v + m - 1) // m) * m


def _budgets():
    """(block_byte_budget, vmem_limit_bytes, has_two_tensorcores) per generation."""
    try:
        vmem = int(pltpu.get_tpu_info().vmem_capacity_bytes)
    except Exception:
        vmem = 64 * 1024 * 1024  # conservative fallback: assume smallest VMEM
    if vmem <= 64 * 1024 * 1024:
        # v7x-like: 64 MiB VMEM per TensorCore, 2 TCs per chip.
        return 16 * 1024 * 1024, 48 * 1024 * 1024, True
    # v5e / v6e: 128 MiB VMEM, single TensorCore.
    return 32 * 1024 * 1024, 64 * 1024 * 1024, False


def _choose_tile_hw(hw, c, in_itemsize, out_itemsize, block_budget):
    """Pick a lane-dense spatial tile sized from PADDED VMEM block bytes."""
    # Sublane multiple for the input block's C axis: 8 for 32-bit, 16 for 16-bit.
    sub_mult = 8 * max(1, 4 // max(in_itemsize, 1))
    c_in_pad = _round_up(c, sub_mult)       # input block sublane padding
    c_out_pad = _round_up(c, 128)           # output block lane padding (C < 128)
    per_pos = (
        2 * c_in_pad * in_itemsize          # double-buffered input column
        + 2 * c_out_pad * out_itemsize      # double-buffered (lane-padded) output row
        + 2 * _round_up(c, 8) * 4           # f32 upcast + normalized-y temporaries
        + c_out_pad * 4                     # f32 transpose result
    )
    t = block_budget // max(per_pos, 1)
    t = max(128, (t // 128) * 128)
    if t >= hw:
        return hw                            # full-extent block is always legal
    return t                                 # multiple of 128 -> lane-dense tile


def _patch_embed_ln_kernel(x_ref, g_ref, b_ref, o_ref):
    """x_ref: (C, T) channels-major block; g_ref/b_ref: (1, C); o_ref: (T, C)."""
    x = x_ref[...].astype(jnp.float32)                          # (C, T), lane-dense
    inv_c = jnp.float32(1.0 / x.shape[0])
    # Fused single-pass stats: one elementwise mul + two sublane reductions.
    mean = jnp.sum(x, axis=0, keepdims=True) * inv_c            # (1, T)
    ex2 = jnp.sum(x * x, axis=0, keepdims=True) * inv_c         # (1, T)
    var = ex2 - mean * mean
    inv = lax.rsqrt(var + EPS)                                  # EUP rsqrt (free slot)
    # Per-element normalize: 2 VALU ops/elem (shift = -mean*inv is per-column).
    y = x * inv - mean * inv                                    # (C, T)
    g = g_ref[...].astype(jnp.float32)                          # (1, C)
    b = b_ref[...].astype(jnp.float32)
    if o_ref.dtype == jnp.float32:
        yt = jnp.transpose(y, (1, 0))                           # (T, C) via XLU
        o_ref[...] = yt * g + b
    else:
        # Narrow output dtype: cast before the transpose (halves XLU bytes /
        # transpose scratch); affine still accumulated in f32.
        yt = jnp.transpose(y.astype(o_ref.dtype), (1, 0))
        o_ref[...] = (yt.astype(jnp.float32) * g + b).astype(o_ref.dtype)


def patch_embed_forward(x_nchw, gamma, beta, *, tile_hw=None):
    """PatchEmbed.forward with norm: (B, C, H, W) -> LayerNorm_C over (B, H*W, C)."""
    B, C, H, W = x_nchw.shape
    HW = H * W

    # flatten(2): trailing-dim merge == free reshape (no extra HBM pass).
    x_flat = x_nchw.reshape(B, C, HW)
    g2 = gamma.reshape(1, C)
    b2 = beta.reshape(1, C)

    block_budget, vmem_limit, two_cores = _budgets()

    if tile_hw is None:
        itemsize = x_nchw.dtype.itemsize
        tile_hw = _choose_tile_hw(HW, C, itemsize, itemsize, block_budget)
    tile_hw = min(int(tile_hw), HW)
    if tile_hw < HW:
        tile_hw = max(128, (tile_hw // 128) * 128)   # keep partial tiles lane-dense

    # Only split a single-block problem when a second TensorCore exists (v7x);
    # on single-TC v5e/v6e the split just adds grid-step overhead.
    if two_cores and B * pl.cdiv(HW, tile_hw) < 2 and HW >= 256:
        tile_hw = max(128, ((HW + 1) // 2 // 128) * 128)

    num_t = pl.cdiv(HW, tile_hw)

    out = pl.pallas_call(
        _patch_embed_ln_kernel,
        out_shape=jax.ShapeDtypeStruct((B, HW, C), x_nchw.dtype),
        grid_spec=pltpu.PrefetchScalarGridSpec(
            num_scalar_prefetch=0,
            grid=(B, num_t),
            in_specs=[
                # (C, tile_hw) channels-major block of batch b: the only HBM read of x.
                # TODO(synk): if traces show exposed DMA waits at small tiles, try
                # pipeline_mode=pl.Buffered(3) here.
                pl.BlockSpec((None, C, tile_hw), lambda b, t: (b, 0, t)),
                pl.BlockSpec((1, C), lambda b, t: (0, 0)),
                pl.BlockSpec((1, C), lambda b, t: (0, 0)),
            ],
            # (tile_hw, C) slab of (B, HW, C): the only HBM write.
            out_specs=pl.BlockSpec((None, tile_hw, C), lambda b, t: (b, t, 0)),
        ),
        compiler_params=pltpu.CompilerParams(
            dimension_semantics=("parallel", "parallel"),
            vmem_limit_bytes=vmem_limit,
        ),
    )(x_flat, g2, b2)

    return out


def _reference(x, gamma, beta):
    b_, c_, h_, w_ = x.shape
    seq = jnp.transpose(x, (0, 2, 3, 1)).reshape(b_, h_ * w_, c_)
    mu = jnp.mean(seq, axis=-1, keepdims=True)
    var = jnp.mean((seq - mu) ** 2, axis=-1, keepdims=True)
    return (seq - mu) * lax.rsqrt(var + EPS) * gamma + beta


if __name__ == "__main__":
    key = jax.random.PRNGKey(0)
    kx, kg, kb, kx2 = jax.random.split(key, 4)

    fwd = jax.jit(patch_embed_forward, static_argnames=("tile_hw",))

    # Test 1: main path. embed_dim == in_chans (= 32) because forward only
    # flattens + LayerNorms the channel dim.
    B, C, H, W = 2, 32, 16, 16
    x = jax.random.normal(kx, (B, C, H, W), dtype=jnp.float32)
    gamma = 1.0 + 0.1 * jax.random.normal(kg, (C,), dtype=jnp.float32)
    beta = 0.1 * jax.random.normal(kb, (C,), dtype=jnp.float32)

    out = jax.block_until_ready(fwd(x, gamma, beta))
    ref = _reference(x, gamma, beta)
    assert out.shape == (B, H * W, C)
    assert jnp.allclose(out, ref, atol=2e-5, rtol=2e-5)

    # Test 2: boundary tiles (HW = 144 not a multiple of the explicit 128-wide
    # tile) to lock in masked boundary-write correctness.
    B2, C2, H2, W2 = 1, 48, 12, 12
    x2 = jax.random.normal(kx2, (B2, C2, H2, W2), dtype=jnp.float32)
    gamma2 = jnp.ones((C2,), dtype=jnp.float32)
    beta2 = jnp.zeros((C2,), dtype=jnp.float32)

    out2 = jax.block_until_ready(fwd(x2, gamma2, beta2, tile_hw=128))
    ref2 = _reference(x2, gamma2, beta2)
    assert out2.shape == (B2, H2 * W2, C2)
    assert jnp.allclose(out2, ref2, atol=2e-5, rtol=2e-5)

    print("KERNEL_OK")
</pallas_src>

<mosaic_0001>
module attributes {stable_mosaic.version = 11 : i64} {
  func.func @_patch_embed_ln_kernel(%arg0: i32, %arg1: i32, %arg2: memref<1x32x256xf32, #tpu.memory_space<vmem>>, %arg3: memref<1x32xf32, #tpu.memory_space<vmem>>, %arg4: memref<1x32xf32, #tpu.memory_space<vmem>>, %arg5: memref<1x256x32xf32, #tpu.memory_space<vmem>>) attributes {dimension_semantics = [#tpu.dimension_semantics<parallel>, #tpu.dimension_semantics<parallel>], iteration_bounds = array<i64: 2, 1>, scalar_prefetch = 0 : i64, scratch_operands = 0 : i64, tpu.core_type = #tpu.core_type<tc>, window_params = [{transform_indices = @transform_0, window_bounds = array<i64: 1, 32, 256>}, {pipeline_mode = #tpu.pipeline_mode<synchronous>, transform_indices = @transform_1, window_bounds = array<i64: 1, 32>}, {pipeline_mode = #tpu.pipeline_mode<synchronous>, transform_indices = @transform_2, window_bounds = array<i64: 1, 32>}, {transform_indices = @transform_3, window_bounds = array<i64: 1, 256, 32>}]} {
    %c0 = arith.constant 0 : index
    %c0_0 = arith.constant 0 : index
    %c0_1 = arith.constant 0 : index
    %0 = vector.load %arg2[%c0, %c0_0, %c0_1] : memref<1x32x256xf32, #tpu.memory_space<vmem>>, vector<1x32x256xf32>
    %1 = vector.shape_cast %0 : vector<1x32x256xf32> to vector<32x256xf32>
    %cst = arith.constant dense<0.000000e+00> : vector<256xf32>
    %2 = vector.multi_reduction <add>, %1, %cst [0] : vector<32x256xf32> to vector<256xf32>
    %3 = vector.shape_cast %2 : vector<256xf32> to vector<1x256xf32>
    %cst_2 = arith.constant 3.125000e-02 : f32
    %4 = vector.broadcast %cst_2 : f32 to vector<1x256xf32>
    %5 = arith.mulf %3, %4 : vector<1x256xf32>
    %6 = arith.mulf %1, %1 : vector<32x256xf32>
    %cst_3 = arith.constant dense<0.000000e+00> : vector<256xf32>
    %7 = vector.multi_reduction <add>, %6, %cst_3 [0] : vector<32x256xf32> to vector<256xf32>
    %8 = vector.shape_cast %7 : vector<256xf32> to vector<1x256xf32>
    %cst_4 = arith.constant 3.125000e-02 : f32
    %9 = vector.broadcast %cst_4 : f32 to vector<1x256xf32>
    %10 = arith.mulf %8, %9 : vector<1x256xf32>
    %11 = arith.mulf %5, %5 : vector<1x256xf32>
    %12 = arith.subf %10, %11 : vector<1x256xf32>
    %cst_5 = arith.constant 9.99999974E-6 : f32
    %13 = vector.broadcast %cst_5 : f32 to vector<1x256xf32>
    %14 = arith.addf %12, %13 : vector<1x256xf32>
    %15 = math.rsqrt %14 : vector<1x256xf32>
    %16 = vector.broadcast %15 : vector<1x256xf32> to vector<32x256xf32>
    %17 = arith.mulf %1, %16 : vector<32x256xf32>
    %18 = arith.mulf %5, %15 : vector<1x256xf32>
    %19 = vector.broadcast %18 : vector<1x256xf32> to vector<32x256xf32>
    %20 = arith.subf %17, %19 : vector<32x256xf32>
    %c0_6 = arith.constant 0 : index
    %c0_7 = arith.constant 0 : index
    %21 = vector.load %arg3[%c0_6, %c0_7] : memref<1x32xf32, #tpu.memory_space<vmem>>, vector<1x32xf32>
    %c0_8 = arith.constant 0 : index
    %c0_9 = arith.constant 0 : index
    %22 = vector.load %arg4[%c0_8, %c0_9] : memref<1x32xf32, #tpu.memory_space<vmem>>, vector<1x32xf32>
    %23 = tpu.transpose %20, [1, 0] : vector<32x256xf32> -> vector<256x32xf32>
    %24 = vector.broadcast %21 : vector<1x32xf32> to vector<256x32xf32>
    %25 = arith.mulf %23, %24 : vector<256x32xf32>
    %26 = vector.broadcast %22 : vector<1x32xf32> to vector<256x32xf32>
    %27 = arith.addf %25, %26 : vector<256x32xf32>
    %c0_10 = arith.constant 0 : index
    %c0_11 = arith.constant 0 : index
    %c0_12 = arith.constant 0 : index
    %28 = vector.load %arg5[%c0_10, %c0_11, %c0_12] : memref<1x256x32xf32, #tpu.memory_space<vmem>>, vector<1x256x32xf32>
    %29 = vector.shape_cast %28 : vector<1x256x32xf32> to vector<256x32xf32>
    %30 = vector.shape_cast %27 : vector<256x32xf32> to vector<1x256x32xf32>
    tpu.vector_store %arg5[%c0_10, %c0_11, %c0_12], %30 {strides = array<i32>} : memref<1x256x32xf32, #tpu.memory_space<vmem>>, vector<1x256x32xf32>,
    return
  }
  func.func @transform_0(%arg0: i32, %arg1: i32) -> (i32, i32, i32) {
    %c0_i32 = arith.constant 0 : i32
    %c0_i32_0 = arith.constant 0 : i32
    return %arg0, %c0_i32, %arg1 : i32, i32, i32
  }
  func.func @transform_1(%arg0: i32, %arg1: i32) -> (i32, i32) {
    %c0_i32 = arith.constant 0 : i32
    %c0_i32_0 = arith.constant 0 : i32
    %c0_i32_1 = arith.constant 0 : i32
    return %c0_i32, %c0_i32_0 : i32, i32
  }
  func.func @transform_2(%arg0: i32, %arg1: i32) -> (i32, i32) {
    %c0_i32 = arith.constant 0 : i32
    %c0_i32_0 = arith.constant 0 : i32
    %c0_i32_1 = arith.constant 0 : i32
    return %c0_i32, %c0_i32_0 : i32, i32
  }
  func.func @transform_3(%arg0: i32, %arg1: i32) -> (i32, i32, i32) {
    %c0_i32 = arith.constant 0 : i32
    %c0_i32_0 = arith.constant 0 : i32
    return %arg0, %arg1, %c0_i32 : i32, i32, i32
  }
}

</mosaic_0001>

<bundles_post_ra>
// kernel: patch_embed_forward.1
= control target key start
LH: loop header
LB: loop body
LE: loop exit
PB: predicated region body
PF: predicated region fallthrough
CT: control target
= control target key end

     0   :  { %s642_s12 = smov 0   ;;  %s644_s13 = smov 0   ;;  %s855_s0 = inlined_call_operand.vmem [shape: f32[2,32,256], index: 0, kind: input, shape index: {}]   ;;  %s856_s1 = inlined_call_operand.vmem [shape: f32[1,32], index: 1, kind: input, shape index: {}]   ;;  %s857_s2 = inlined_call_operand.vmem [shape: f32[1,32], index: 2, kind: input, shape index: {}]   ;;  %s858_s3 = inlined_call_operand.vmem [shape: f32[2,256,32], index: 3, kind: output, shape index: {}]  }
   0x1   :  { %s646_s14 = smov 0  }
   0x2 LB: > { %s25_s15 = sadd.s32 1, %s616_s13  ;;  %p558_p0 = scmp.ge.s32.totalorder %s620_s14, 1  ;;  %s620_s14 = sphi %s646_s14, %s13_s14   ;;  %s616_s13 = sphi %s644_s13, %s860_s13   ;;  %s612_s12 = sphi %s642_s12, %s859_s12  }
   0x3   : > { %p27_p1 = scmp.ge.s32.totalorder %s25_s15, 2  ;;  %p158_p2 = scmp.lt.s32.totalorder %s620_s14, 3 }
   0x5   : > { %s862_s15 = smov (%p27_p1, %s25_s15), 0  ;;  %p159_p3 = pnand %p558_p0, %p158_p2 }
   0x6   : > { %p191_p4 = scmp.lt.s32.totalorder (!%p159_p3), %s612_s12, 1  ;;  %vm434_vm0 = vcmask (!%p159_p3), 261120  }
   0x7   : > { %162 = sbr.rel (%p159_p3) target bundleno = 254 (0xfe), region = 32 }
   0xe   : > { %s864_s12 = smov (!%p191_p4, %s612_s12), 1 }
   0xf   : > { %s567_s16 = sshll.u32 %s864_s12, 6  ;;  %s568_s22 = sshll.u32 %s864_s12, 8 }
  0x10   : > { %s198_s19 = scalar_lea.vmem %s855_s0, %s567_s16  ;;  %s717_s27 = scalar_lea.vmem %s858_s3, %s568_s22 }
  0x11   : > { %v666_v0 = vld [vmem:[%s198_s19 + $0x8] sm:$0xff]  ;;  %v668_v1 = vld [vmem:[%s198_s19 + $0x18] sm:$0xff]  ;;  %v210_v8 = vld [vmem:[%s198_s19] sm:$0xff] }
  0x12   : > { %v670_v2 = vld [vmem:[%s198_s19 + $0x28] sm:$0xff]  ;;  %v672_v3 = vld [vmem:[%s198_s19 + $0x38] sm:$0xff]  ;;  %v227_v4 = vadd.f32 %v668_v1, %v666_v0  ;;  %v239_v5 = vmul.f32 %v666_v0, %v666_v0  ;;  %v241_v6 = vmul.f32 %v668_v1, %v668_v1  ;;  %v212_v9 = vld [vmem:[%s198_s19 + $0x10] sm:$0xff]  ;;  %v238_v13 = vmul.f32 %v210_v8, %v210_v8 }
  0x13   : > { %v243_v7 = vmul.f32 %v670_v2, %v670_v2  ;;  %v682_v10 = vld [vmem:[%s198_s19 + $0x20] sm:$0xff]  ;;  %v684_v11 = vld [vmem:[%s198_s19 + $0x30] sm:$0xff]  ;;  %v218_v12 = vadd.f32 %v212_v9, %v210_v8  ;;  %v240_v14 = vmul.f32 %v212_v9, %v212_v9  ;;  %v245_v16 = vmul.f32 %v672_v3, %v672_v3 }
  0x14   : > { %v228_v15 = vadd.f32 %v227_v4, %v670_v2  ;;  %v255_v17 = vadd.f32 %v241_v6, %v239_v5  ;;  %v242_v18 = vmul.f32 %v682_v10, %v682_v10  ;;  %v244_v20 = vmul.f32 %v684_v11, %v684_v11 }
  0x15   : > { %v219_v19 = vadd.f32 %v218_v12, %v682_v10  ;;  %v246_v21 = vadd.f32 %v240_v14, %v238_v13 }
  0x16   : > { %v229_v22 = vadd.f32 %v228_v15, %v672_v3  ;;  %v256_v23 = vadd.f32 %v255_v17, %v243_v7 }
  0x17   : > { %v220_v24 = vadd.f32 %v219_v19, %v684_v11  ;;  %v247_v25 = vadd.f32 %v246_v21, %v242_v18 }
  0x18   : > { %v230_v26 = vrot.slane %v229_v22, 4  ;;  %v257_v27 = vadd.f32 %v256_v23, %v245_v16 }
  0x19   : > { %v221_v28 = vrot.slane %v220_v24, 4  ;;  %v248_v29 = vadd.f32 %v247_v25, %v244_v20 }
  0x1a   : > { %v231_v30 = vadd.f32 %v230_v26, %v229_v22  ;;  %v258_v31 = vrot.slane %v257_v27, 4 }
  0x1b   : > { %v222_v32 = vadd.f32 %v221_v28, %v220_v24  ;;  %v249_v33 = vrot.slane %v248_v29, 4 }
  0x1c   : > { %v232_v34 = vrot.slane %v231_v30, 2  ;;  %v259_v35 = vadd.f32 %v258_v31, %v257_v27 }
  0x1d   : > { %v223_v36 = vrot.slane %v222_v32, 2  ;;  %v250_v37 = vadd.f32 %v249_v33, %v248_v29 }
  0x1e   : > { %v233_v38 = vadd.f32 %v232_v34, %v231_v30  ;;  %v260_v39 = vrot.slane %v259_v35, 2 }
  0x1f   : > { %v224_v40 = vadd.f32 %v223_v36, %v222_v32  ;;  %v251_v41 = vrot.slane %v250_v37, 2 }
  0x20   : > { %v234_v42 = vrot.slane %v233_v38, 1  ;;  %v261_v43 = vadd.f32 %v260_v39, %v259_v35 }
  0x21   : > { %v225_v44 = vrot.slane %v224_v40, 1  ;;  %v252_v45 = vadd.f32 %v251_v41, %v250_v37 }
  0x22   : > { %v235_v46 = vadd.f32 %v234_v42, %v233_v38  ;;  %v262_v47 = vrot.slane %v261_v43, 1 }
  0x23   : > { %v226_v48 = vadd.f32 %v225_v44, %v224_v40  ;;  %v253_v49 = vrot.slane %v252_v45, 1 }
  0x24   : > { %v237_v50 = vmul.f32 0.03125, %v235_v46  ;;  %v263_v51 = vadd.f32 %v262_v47, %v261_v43 }
  0x25   : > { %v236_v52 = vmul.f32 0.03125, %v226_v48  ;;  %v254_v53 = vadd.f32 %v253_v49, %v252_v45 }
  0x26   : > { %v265_v54 = vmul.f32 0.03125, %v263_v51  ;;  %v267_v55 = vmul.f32 %v237_v50, %v237_v50 }
  0x27   : > { %v264_v56 = vmul.f32 0.03125, %v254_v53  ;;  %v266_v57 = vmul.f32 %v236_v52, %v236_v52 }
  0x28   : > { %v269_v58 = vsub.f32 %v265_v54, %v267_v55 }
  0x29   : > { %v268_v59 = vsub.f32 %v264_v56, %v266_v57 }
  0x2a   : > { %v271_v60 = vadd.f32 1e-05, %v269_v58 }
  0x2b   : > { %v270_v61 = vadd.f32 1e-05, %v268_v59 }
  0x2c   : > { %594 = vrsqrt.f32 %v271_v60 }
  0x2d   : > { %596 = vrsqrt.f32 %v270_v61 }
  0x36   : > { %v595_v62 = vpop.eup %594 }
  0x37   : > { %v597_v63 = vpop.eup %596  ;;  %v275_v4 = vmul.f32 %v595_v62, %v666_v0  ;;  %v283_v5 = vmul.f32 %v595_v62, %v237_v50  ;;  %v277_v6 = vmul.f32 %v595_v62, %v668_v1  ;;  %v279_v17 = vmul.f32 %v595_v62, %v670_v2  ;;  %v705_v2 = vld [vmem:[%s856_s1] ss:$0 sm:$0xff] }
  0x38   : > { %v274_v7 = vmul.f32 %v597_v63, %v210_v8  ;;  %v282_v12 = vmul.f32 %v597_v63, %v236_v52  ;;  %v276_v13 = vmul.f32 %v597_v63, %v212_v9  ;;  %v278_v19 = vmul.f32 %v597_v63, %v682_v10 }
  0x39   : > { %v285_v14 = vsub.f32 %v275_v4, %v283_v5  ;;  %v287_v16 = vsub.f32 %v277_v6, %v283_v5  ;;  %v289_v20 = vsub.f32 %v279_v17, %v283_v5  ;;  %v281_v0 = vmul.f32 %v595_v62, %v672_v3  ;;  %v711_v3 = vld [vmem:[%s857_s2] ss:$0 sm:$0xff] }
  0x3a   : > { %v284_v15 = vsub.f32 %v274_v7, %v282_v12  ;;  %v286_v18 = vsub.f32 %v276_v13, %v282_v12  ;;  %v288_v1 = vsub.f32 %v278_v19, %v282_v12  ;;  %v280_v8 = vmul.f32 %v597_v63, %v684_v11 }
  0x3b   : > { %326 = vxpose.xlu1.b32.start [1/4] (short) %v285_v14, 128  ;;  %v291_v9 = vsub.f32 %v281_v0, %v283_v5 }
  0x3c   : > { %294 = vxpose.xlu0.b32.start [1/4] (short) %v284_v15, 128  ;;  %v290_v21 = vsub.f32 %v280_v8, %v282_v12 }
  0x3f   : > { %327 = vxpose.xlu1.b32.cont [2/4] (short) %v287_v16, 128 }
  0x40   : > { %295 = vxpose.xlu0.b32.cont [2/4] (short) %v286_v18, 128 }
  0x43   : > { %328 = vxpose.xlu1.b32.cont [3/4] (short) %v289_v20, 128 }
  0x44   : > { %296 = vxpose.xlu0.b32.cont [3/4] (short) %v288_v1, 128 }
  0x47   : > { %329 = vxpose.xlu1.b32.end [4/4] (short) %v291_v9, 128 }
  0x48   : > { %297 = vxpose.xlu0.b32.end [4/4] (short) %v290_v21, 128 }
  0xbb   : > { %v342_v10 = vpop.trf.xlu1 }
  0xbc   : > { %v380_v11 = vmul.f32 %v705_v2, %v342_v10  ;;  %v310_v22 = vpop.trf.xlu0 }
  0xbd   : > { %v364_v23 = vmul.f32 %v705_v2, %v310_v22 }
  0xbe   : > { %v418_v24 = vadd.f32 %v711_v3, %v380_v11 }
  0xbf   : > { %v402_v25 = vadd.f32 %v711_v3, %v364_v23  ;;  %v343_v26 = vpop.trf.xlu1 }
  0xc0   : > { %451 = vst.msk [vmem:[%s717_s27 + $0x80] sm:$0xff] %vm434_vm0, %v418_v24  ;;  %v381_v27 = vmul.f32 %v705_v2, %v343_v26  ;;  %v311_v28 = vpop.trf.xlu0 }
  0xc1   : > { %435 = vst.msk [vmem:[%s717_s27] sm:$0xff] %vm434_vm0, %v402_v25  ;;  %v365_v29 = vmul.f32 %v705_v2, %v311_v28 }
  0xc2   : > { %v419_v30 = vadd.f32 %v711_v3, %v381_v27 }
  0xc3   : > { %v403_v31 = vadd.f32 %v711_v3, %v365_v29  ;;  %v344_v32 = vpop.trf.xlu1 }
  0xc4   : > { %452 = vst.msk [vmem:[%s717_s27 + $0x88] sm:$0xff] %vm434_vm0, %v419_v30  ;;  %v382_v33 = vmul.f32 %v705_v2, %v344_v32  ;;  %v312_v34 = vpop.trf.xlu0 }
  0xc5   : > { %436 = vst.msk [vmem:[%s717_s27 + $0x8] sm:$0xff] %vm434_vm0, %v403_v31  ;;  %v366_v35 = vmul.f32 %v705_v2, %v312_v34 }
  0xc6   : > { %v420_v36 = vadd.f32 %v711_v3, %v382_v33 }
  0xc7   : > { %v404_v37 = vadd.f32 %v711_v3, %v366_v35  ;;  %v345_v38 = vpop.trf.xlu1 }
  0xc8   : > { %453 = vst.msk [vmem:[%s717_s27 + $0x90] sm:$0xff] %vm434_vm0, %v420_v36  ;;  %v383_v39 = vmul.f32 %v705_v2, %v345_v38  ;;  %v313_v40 = vpop.trf.xlu0 }
  0xc9   : > { %437 = vst.msk [vmem:[%s717_s27 + $0x10] sm:$0xff] %vm434_vm0, %v404_v37  ;;  %v367_v41 = vmul.f32 %v705_v2, %v313_v40 }
  0xca   : > { %v421_v42 = vadd.f32 %v711_v3, %v383_v39 }
  0xcb   : > { %v405_v43 = vadd.f32 %v711_v3, %v367_v41  ;;  %v346_v44 = vpop.trf.xlu1 }
  0xcc   : > { %454 = vst.msk [vmem:[%s717_s27 + $0x98] sm:$0xff] %vm434_vm0, %v421_v42  ;;  %v384_v45 = vmul.f32 %v705_v2, %v346_v44  ;;  %v314_v46 = vpop.trf.xlu0 }
  0xcd   : > { %438 = vst.msk [vmem:[%s717_s27 + $0x18] sm:$0xff] %vm434_vm0, %v405_v43  ;;  %v368_v47 = vmul.f32 %v705_v2, %v314_v46 }
  0xce   : > { %v422_v48 = vadd.f32 %v711_v3, %v384_v45 }
  0xcf   : > { %v406_v49 = vadd.f32 %v711_v3, %v368_v47  ;;  %v347_v50 = vpop.trf.xlu1 }
  0xd0   : > { %455 = vst.msk [vmem:[%s717_s27 + $0xa0] sm:$0xff] %vm434_vm0, %v422_v48  ;;  %v385_v51 = vmul.f32 %v705_v2, %v347_v50  ;;  %v315_v52 = vpop.trf.xlu0 }
  0xd1   : > { %439 = vst.msk [vmem:[%s717_s27 + $0x20] sm:$0xff] %vm434_vm0, %v406_v49  ;;  %v369_v53 = vmul.f32 %v705_v2, %v315_v52 }
  0xd2   : > { %v423_v54 = vadd.f32 %v711_v3, %v385_v51 }
  0xd3   : > { %v407_v55 = vadd.f32 %v711_v3, %v369_v53  ;;  %v348_v56 = vpop.trf.xlu1 }
  0xd4   : > { %456 = vst.msk [vmem:[%s717_s27 + $0xa8] sm:$0xff] %vm434_vm0, %v423_v54  ;;  %v386_v57 = vmul.f32 %v705_v2, %v348_v56  ;;  %v316_v58 = vpop.trf.xlu0 }
  0xd5   : > { %440 = vst.msk [vmem:[%s717_s27 + $0x28] sm:$0xff] %vm434_vm0, %v407_v55  ;;  %v370_v59 = vmul.f32 %v705_v2, %v316_v58 }
  0xd6   : > { %v424_v60 = vadd.f32 %v711_v3, %v386_v57 }
  0xd7   : > { %v408_v61 = vadd.f32 %v711_v3, %v370_v59  ;;  %v349_v62 = vpop.trf.xlu1 }
  0xd8   : > { %457 = vst.msk [vmem:[%s717_s27 + $0xb0] sm:$0xff] %vm434_vm0, %v424_v60  ;;  %v387_v63 = vmul.f32 %v705_v2, %v349_v62  ;;  %v317_v4 = vpop.trf.xlu0 }
  0xd9   : > { %441 = vst.msk [vmem:[%s717_s27 + $0x30] sm:$0xff] %vm434_vm0, %v408_v61  ;;  %v371_v5 = vmul.f32 %v705_v2, %v317_v4 }
  0xda   : > { %v425_v6 = vadd.f32 %v711_v3, %v387_v63 }
  0xdb   : > { %v409_v7 = vadd.f32 %v711_v3, %v371_v5  ;;  %v350_v12 = vpop.trf.xlu1 }
  0xdc   : > { %458 = vst.msk [vmem:[%s717_s27 + $0xb8] sm:$0xff] %vm434_vm0, %v425_v6  ;;  %v388_v13 = vmul.f32 %v705_v2, %v350_v12  ;;  %v318_v14 = vpop.trf.xlu0 }
  0xdd   : > { %442 = vst.msk [vmem:[%s717_s27 + $0x38] sm:$0xff] %vm434_vm0, %v409_v7  ;;  %v372_v15 = vmul.f32 %v705_v2, %v318_v14 }
  0xde   : > { %v426_v16 = vadd.f32 %v711_v3, %v388_v13 }
  0xdf   : > { %v410_v17 = vadd.f32 %v711_v3, %v372_v15  ;;  %v351_v18 = vpop.trf.xlu1 }
  0xe0   : > { %459 = vst.msk [vmem:[%s717_s27 + $0xc0] sm:$0xff] %vm434_vm0, %v426_v16  ;;  %v389_v19 = vmul.f32 %v705_v2, %v351_v18  ;;  %v319_v20 = vpop.trf.xlu0 }
  0xe1   : > { %443 = vst.msk [vmem:[%s717_s27 + $0x40] sm:$0xff] %vm434_vm0, %v410_v17  ;;  %v373_v0 = vmul.f32 %v705_v2, %v319_v20 }
  0xe2   : > { %v427_v1 = vadd.f32 %v711_v3, %v389_v19 }
  0xe3   : > { %v411_v8 = vadd.f32 %v711_v3, %v373_v0  ;;  %v352_v9 = vpop.trf.xlu1 }
  0xe4   : > { %460 = vst.msk [vmem:[%s717_s27 + $0xc8] sm:$0xff] %vm434_vm0, %v427_v1  ;;  %v390_v21 = vmul.f32 %v705_v2, %v352_v9  ;;  %v320_v10 = vpop.trf.xlu0 }
  0xe5   : > { %444 = vst.msk [vmem:[%s717_s27 + $0x48] sm:$0xff] %vm434_vm0, %v411_v8  ;;  %v374_v11 = vmul.f32 %v705_v2, %v320_v10 }
  0xe6   : > { %v428_v22 = vadd.f32 %v711_v3, %v390_v21 }
  0xe7   : > { %v412_v23 = vadd.f32 %v711_v3, %v374_v11  ;;  %v353_v24 = vpop.trf.xlu1 }
  0xe8   : > { %461 = vst.msk [vmem:[%s717_s27 + $0xd0] sm:$0xff] %vm434_vm0, %v428_v22  ;;  %v391_v25 = vmul.f32 %v705_v2, %v353_v24  ;;  %v321_v26 = vpop.trf.xlu0 }
  0xe9   : > { %445 = vst.msk [vmem:[%s717_s27 + $0x50] sm:$0xff] %vm434_vm0, %v412_v23  ;;  %v375_v27 = vmul.f32 %v705_v2, %v321_v26 }
  0xea   : > { %v429_v28 = vadd.f32 %v711_v3, %v391_v25 }
  0xeb   : > { %v413_v29 = vadd.f32 %v711_v3, %v375_v27  ;;  %v354_v30 = vpop.trf.xlu1 }
  0xec   : > { %462 = vst.msk [vmem:[%s717_s27 + $0xd8] sm:$0xff] %vm434_vm0, %v429_v28  ;;  %v392_v31 = vmul.f32 %v705_v2, %v354_v30  ;;  %v322_v32 = vpop.trf.xlu0 }
  0xed   : > { %446 = vst.msk [vmem:[%s717_s27 + $0x58] sm:$0xff] %vm434_vm0, %v413_v29  ;;  %v376_v33 = vmul.f32 %v705_v2, %v322_v32 }
  0xee   : > { %v430_v34 = vadd.f32 %v711_v3, %v392_v31 }
  0xef   : > { %v414_v35 = vadd.f32 %v711_v3, %v376_v33  ;;  %v355_v36 = vpop.trf.xlu1 }
  0xf0   : > { %463 = vst.msk [vmem:[%s717_s27 + $0xe0] sm:$0xff] %vm434_vm0, %v430_v34  ;;  %v393_v37 = vmul.f32 %v705_v2, %v355_v36  ;;  %v323_v38 = vpop.trf.xlu0 }
  0xf1   : > { %447 = vst.msk [vmem:[%s717_s27 + $0x60] sm:$0xff] %vm434_vm0, %v414_v35  ;;  %v377_v39 = vmul.f32 %v705_v2, %v323_v38 }
  0xf2   : > { %v431_v40 = vadd.f32 %v711_v3, %v393_v37 }
  0xf3   : > { %v415_v41 = vadd.f32 %v711_v3, %v377_v39  ;;  %v356_v42 = vpop.trf.xlu1 }
  0xf4   : > { %464 = vst.msk [vmem:[%s717_s27 + $0xe8] sm:$0xff] %vm434_vm0, %v431_v40  ;;  %v394_v43 = vmul.f32 %v705_v2, %v356_v42  ;;  %v324_v44 = vpop.trf.xlu0 }
  0xf5   : > { %448 = vst.msk [vmem:[%s717_s27 + $0x68] sm:$0xff] %vm434_vm0, %v415_v41  ;;  %v378_v45 = vmul.f32 %v705_v2, %v324_v44 }
  0xf6   : > { %v432_v46 = vadd.f32 %v711_v3, %v394_v43 }
  0xf7   : > { %v416_v47 = vadd.f32 %v711_v3, %v378_v45  ;;  %v357_v48 = vpop.trf.xlu1 }
  0xf8   : > { %465 = vst.msk [vmem:[%s717_s27 + $0xf0] sm:$0xff] %vm434_vm0, %v432_v46  ;;  %v395_v49 = vmul.f32 %v705_v2, %v357_v48  ;;  %v325_v50 = vpop.trf.xlu0 }
  0xf9   : > { %449 = vst.msk [vmem:[%s717_s27 + $0x70] sm:$0xff] %vm434_vm0, %v416_v47  ;;  %v379_v51 = vmul.f32 %v705_v2, %v325_v50 }
  0xfa   : > { %v433_v52 = vadd.f32 %v711_v3, %v395_v49 }
  0xfb   : > { %v417_v53 = vadd.f32 %v711_v3, %v379_v51 }
  0xfc   : > { %466 = vst.msk [vmem:[%s717_s27 + $0xf8] sm:$0xff] %vm434_vm0, %v433_v52 }
  0xfd   : > { %450 = vst.msk [vmem:[%s717_s27 + $0x78] sm:$0xff] %vm434_vm0, %v417_v53 }
  0xfe PF: > { %s13_s14 = sadd.s32 1, %s620_s14   ;;  %s859_s12 = smov %s616_s13 }
  0xff   : > { %p10_p5 = scmp.ge.s32.totalorder %s13_s14, 4   ;;  %s860_s13 = smov %s862_s15 }
 0x101   :  { %12 = sbr.rel (!%p10_p5) target bundleno = 2 (0x2), region = 62 }

</bundles_post_ra>
